<compile_context>
chip_gen: v5e
topology: v5e:2x2
jax: 0.10.0
libtpu: 0.0.40
codegen_flags: <defaults>
</compile_context>

<pallas_src>
import functools

import jax
import jax.numpy as jnp
from jax.experimental import pallas as pl
from jax.experimental.pallas import tpu as pltpu


HIDDEN = 64
HEAD_FUSED = 2 * HIDDEN   # [advantage-hidden | value-hidden] fills 128 lanes exactly
OUT_LANES = 128           # lane-dense output slab; wrapper slices [:, :action_size]
TILE_B_CAP = 1024         # batch-tile cap: 1024x128 f32 out tile = 512 KiB, x2 buffers
                          # -> comfortably inside v5e's 16 MiB scoped / v7x's 64 MiB VMEM

_PREC = jax.lax.Precision.HIGHEST  # exact f32 MXU accumulation (PyTorch f32 parity)


def dueling_q_kernel(x_ref,
                     w1_ref, b1_ref,     # feature Linear(state_size, 64)
                     w2_ref, b2_ref,     # feature Linear(64, 64)
                     wh_ref, bh_ref,     # fused head hidden Linear(64, 128) = [wa1 | wv1]
                     wo_ref, bo_ref,     # fused head output Linear(128, 128) with the
                     out_ref):           #   dueling combine folded into the weights
    x = x_ref[...]

    # feature extractor: Linear -> ReLU -> Linear -> ReLU
    h = jnp.dot(x, w1_ref[...], precision=_PREC,
                preferred_element_type=jnp.float32) + b1_ref[...]
    h = jnp.maximum(h, 0.0)
    h = jnp.dot(h, w2_ref[...], precision=_PREC,
                preferred_element_type=jnp.float32) + b2_ref[...]
    h = jnp.maximum(h, 0.0)

    # fused head hidden layers: one (TILE_B,64)x(64,128) matmul -> [adv_h | val_h]
    hh = jnp.dot(h, wh_ref[...], precision=_PREC,
                 preferred_element_type=jnp.float32) + bh_ref[...]
    hh = jnp.maximum(hh, 0.0)

    # fused head output: one (TILE_B,128)x(128,128) matmul already yields
    # q = v + a - mean(a) in lanes [0, A); lanes >= A are exactly 0.
    out_ref[...] = jnp.dot(hh, wo_ref[...], precision=_PREC,
                           preferred_element_type=jnp.float32) + bo_ref[...]


def pack_params(p, action_size):
    """Fuse both heads AND the dueling combine into two matmuls' weights."""
    A = action_size
    assert A <= OUT_LANES, "action_size must fit in the 128-lane output slab"

    # Head hidden layers concatenated along the output dim.
    w_heads = jnp.concatenate([p["wa1"], p["wv1"]], axis=1)            # (64, 128)
    b_heads = jnp.concatenate([p["ba1"], p["bv1"]], axis=1)            # (1, 128)

    # Fold q_j = adv_h @ (wa2[:,j] - mean_cols(wa2)) + val_h @ wv2
    #           + (ba2_j - mean(ba2) + bv2)
    wa2_centered = p["wa2"] - jnp.mean(p["wa2"], axis=1, keepdims=True)  # (64, A)
    w_out = jnp.zeros((HEAD_FUSED, OUT_LANES), jnp.float32)
    w_out = w_out.at[:HIDDEN, :A].set(wa2_centered)                      # advantage block
    w_out = w_out.at[HIDDEN:, :A].set(jnp.broadcast_to(p["wv2"], (HIDDEN, A)))  # value block
    b_out = jnp.zeros((1, OUT_LANES), jnp.float32)
    b_out = b_out.at[:, :A].set(p["ba2"] - jnp.mean(p["ba2"]) + p["bv2"])

    return (p["w1"], p["b1"], p["w2"], p["b2"], w_heads, b_heads, w_out, b_out)


def _resident_spec(arr):
    """Full-array block with a constant index_map -> stays VMEM-resident across grid steps."""
    return pl.BlockSpec(arr.shape, lambda i: (0, 0))


def dueling_q_forward(state, params, action_size, tile_b_cap=TILE_B_CAP):
    """state: (B, state_size) f32. Returns (B, action_size) f32 Q-values."""
    B, state_size = state.shape

    # Pad batch to a multiple of 8 sublanes, then to a multiple of the batch tile.
    b8 = max(8, -(-B // 8) * 8)
    tile_b = min(tile_b_cap, b8)          # both are multiples of 8
    b_pad = -(-b8 // tile_b) * tile_b
    if b_pad != B:
        state = jnp.pad(state, ((0, b_pad - B), (0, 0)))

    weights = pack_params(params, action_size)
    grid = (b_pad // tile_b,)

    in_specs = [pl.BlockSpec((tile_b, state_size), lambda i: (i, 0))]   # batch-tiled input
    in_specs += [_resident_spec(w) for w in weights]                     # resident weights

    out = pl.pallas_call(
        dueling_q_kernel,
        out_shape=jax.ShapeDtypeStruct((b_pad, OUT_LANES), jnp.float32),
        grid=grid,
        in_specs=in_specs,
        out_specs=pl.BlockSpec((tile_b, OUT_LANES), lambda i: (i, 0)),
        compiler_params=pltpu.CompilerParams(
            dimension_semantics=("parallel",)),      # shard batch tiles across v7x's 2 TCs
    )(state, *weights)

    return out[:B, :action_size]


def init_params(key, state_size, action_size, hidden=HIDDEN):
    """Deterministic init mimicking PyTorch nn.Linear uniform(-1/sqrt(fan_in), 1/sqrt(fan_in))."""
    def linear(k, fan_in, fan_out):
        kw, kb = jax.random.split(k)
        bound = 1.0 / jnp.sqrt(fan_in)
        w = jax.random.uniform(kw, (fan_in, fan_out), jnp.float32, -bound, bound)
        b = jax.random.uniform(kb, (1, fan_out), jnp.float32, -bound, bound)
        return w, b

    keys = jax.random.split(key, 6)
    w1, b1 = linear(keys[0], state_size, hidden)
    w2, b2 = linear(keys[1], hidden, hidden)
    wa1, ba1 = linear(keys[2], hidden, hidden)
    wa2, ba2 = linear(keys[3], hidden, action_size)
    wv1, bv1 = linear(keys[4], hidden, 1 * hidden)
    wv2, bv2 = linear(keys[5], hidden, 1)
    return dict(w1=w1, b1=b1, w2=w2, b2=b2,
                wa1=wa1, ba1=ba1, wa2=wa2, ba2=ba2,
                wv1=wv1, bv1=bv1, wv2=wv2, bv2=bv2)


def reference_forward(state, p):
    """Pure-JAX reference with the original (unfused) parameters — same math as PyTorch."""
    dot = functools.partial(jnp.dot, precision=_PREC)   # f32 parity with the kernel
    h = jnp.maximum(dot(state, p["w1"]) + p["b1"], 0.0)
    h = jnp.maximum(dot(h, p["w2"]) + p["b2"], 0.0)
    a = dot(jnp.maximum(dot(h, p["wa1"]) + p["ba1"], 0.0), p["wa2"]) + p["ba2"]
    v = dot(jnp.maximum(dot(h, p["wv1"]) + p["bv1"], 0.0), p["wv2"]) + p["bv2"]
    return v + a - jnp.mean(a, axis=1, keepdims=True)


if __name__ == "__main__":
    key = jax.random.PRNGKey(0)
    k_params, k_state = jax.random.split(key)

    batch = 2
    state_size = 8
    action_size = 4

    params = init_params(k_params, state_size, action_size)
    state = jax.random.normal(k_state, (batch, state_size), jnp.float32)

    out = jax.block_until_ready(dueling_q_forward(state, params, action_size))
    ref = reference_forward(state, params)

    assert out.shape == (batch, action_size)
    assert jnp.allclose(out, ref, atol=1e-5, rtol=1e-5), "mismatch vs reference"

    # Also exercise a batch large enough to tile (multiple grid steps).
    big_state = jax.random.normal(k_state, (2500, state_size), jnp.float32)
    big_out = jax.block_until_ready(dueling_q_forward(big_state, params, action_size))
    big_ref = reference_forward(big_state, params)
    assert big_out.shape == (2500, action_size)
    assert jnp.allclose(big_out, big_ref, atol=1e-5, rtol=1e-5), "mismatch vs reference (tiled)"

    print("KERNEL_OK")
</pallas_src>

<mosaic_0001>
module attributes {stable_mosaic.version = 11 : i64} {
  func.func @dueling_q_kernel(%arg0: i32, %arg1: memref<8x8xf32, #tpu.memory_space<vmem>>, %arg2: memref<8x64xf32, #tpu.memory_space<vmem>>, %arg3: memref<1x64xf32, #tpu.memory_space<vmem>>, %arg4: memref<64x64xf32, #tpu.memory_space<vmem>>, %arg5: memref<1x64xf32, #tpu.memory_space<vmem>>, %arg6: memref<64x128xf32, #tpu.memory_space<vmem>>, %arg7: memref<1x128xf32, #tpu.memory_space<vmem>>, %arg8: memref<128x128xf32, #tpu.memory_space<vmem>>, %arg9: memref<1x128xf32, #tpu.memory_space<vmem>>, %arg10: memref<8x128xf32, #tpu.memory_space<vmem>>) attributes {dimension_semantics = [#tpu.dimension_semantics<parallel>], iteration_bounds = array<i64: 1>, scalar_prefetch = 0 : i64, scratch_operands = 0 : i64, tpu.core_type = #tpu.core_type<tc>, window_params = [{transform_indices = @transform_0, window_bounds = array<i64: 8, 8>}, {pipeline_mode = #tpu.pipeline_mode<synchronous>, transform_indices = @transform_1, window_bounds = array<i64: 8, 64>}, {pipeline_mode = #tpu.pipeline_mode<synchronous>, transform_indices = @transform_2, window_bounds = array<i64: 1, 64>}, {pipeline_mode = #tpu.pipeline_mode<synchronous>, transform_indices = @transform_3, window_bounds = array<i64: 64, 64>}, {pipeline_mode = #tpu.pipeline_mode<synchronous>, transform_indices = @transform_4, window_bounds = array<i64: 1, 64>}, {pipeline_mode = #tpu.pipeline_mode<synchronous>, transform_indices = @transform_5, window_bounds = array<i64: 64, 128>}, {pipeline_mode = #tpu.pipeline_mode<synchronous>, transform_indices = @transform_6, window_bounds = array<i64: 1, 128>}, {pipeline_mode = #tpu.pipeline_mode<synchronous>, transform_indices = @transform_7, window_bounds = array<i64: 128, 128>}, {pipeline_mode = #tpu.pipeline_mode<synchronous>, transform_indices = @transform_8, window_bounds = array<i64: 1, 128>}, {transform_indices = @transform_9, window_bounds = array<i64: 8, 128>}]} {
    %c0 = arith.constant 0 : index
    %c0_0 = arith.constant 0 : index
    %0 = vector.load %arg1[%c0, %c0_0] : memref<8x8xf32, #tpu.memory_space<vmem>>, vector<8x8xf32>
    %c0_1 = arith.constant 0 : index
    %c0_2 = arith.constant 0 : index
    %1 = vector.load %arg2[%c0_1, %c0_2] : memref<8x64xf32, #tpu.memory_space<vmem>>, vector<8x64xf32>
    %cst = arith.constant dense<0.000000e+00> : vector<8x64xf32>
    %2 = tpu.matmul %0, %1, %cst {dimension_numbers = #tpu.dot_dimension_numbers<[1], [0], [0], [1], [0, 0, 1, 1], [], []>, precision = #tpu.contract_precision<fp32>} : vector<8x8xf32>, vector<8x64xf32>, vector<8x64xf32> -> vector<8x64xf32>
    %c0_3 = arith.constant 0 : index
    %c0_4 = arith.constant 0 : index
    %3 = vector.load %arg3[%c0_3, %c0_4] : memref<1x64xf32, #tpu.memory_space<vmem>>, vector<1x64xf32>
    %4 = vector.broadcast %3 : vector<1x64xf32> to vector<8x64xf32>
    %5 = arith.addf %2, %4 : vector<8x64xf32>
    %cst_5 = arith.constant 0.000000e+00 : f32
    %6 = vector.broadcast %cst_5 : f32 to vector<8x64xf32>
    %7 = arith.maximumf %5, %6 : vector<8x64xf32>
    %c0_6 = arith.constant 0 : index
    %c0_7 = arith.constant 0 : index
    %8 = vector.load %arg4[%c0_6, %c0_7] : memref<64x64xf32, #tpu.memory_space<vmem>>, vector<64x64xf32>
    %cst_8 = arith.constant dense<0.000000e+00> : vector<8x64xf32>
    %9 = tpu.matmul %7, %8, %cst_8 {dimension_numbers = #tpu.dot_dimension_numbers<[1], [0], [0], [1], [0, 0, 1, 1], [], []>, precision = #tpu.contract_precision<fp32>} : vector<8x64xf32>, vector<64x64xf32>, vector<8x64xf32> -> vector<8x64xf32>
    %c0_9 = arith.constant 0 : index
    %c0_10 = arith.constant 0 : index
    %10 = vector.load %arg5[%c0_9, %c0_10] : memref<1x64xf32, #tpu.memory_space<vmem>>, vector<1x64xf32>
    %11 = vector.broadcast %10 : vector<1x64xf32> to vector<8x64xf32>
    %12 = arith.addf %9, %11 : vector<8x64xf32>
    %cst_11 = arith.constant 0.000000e+00 : f32
    %13 = vector.broadcast %cst_11 : f32 to vector<8x64xf32>
    %14 = arith.maximumf %12, %13 : vector<8x64xf32>
    %c0_12 = arith.constant 0 : index
    %c0_13 = arith.constant 0 : index
    %15 = vector.load %arg6[%c0_12, %c0_13] : memref<64x128xf32, #tpu.memory_space<vmem>>, vector<64x128xf32>
    %cst_14 = arith.constant dense<0.000000e+00> : vector<8x128xf32>
    %16 = tpu.matmul %14, %15, %cst_14 {dimension_numbers = #tpu.dot_dimension_numbers<[1], [0], [0], [1], [0, 0, 1, 1], [], []>, precision = #tpu.contract_precision<fp32>} : vector<8x64xf32>, vector<64x128xf32>, vector<8x128xf32> -> vector<8x128xf32>
    %c0_15 = arith.constant 0 : index
    %c0_16 = arith.constant 0 : index
    %17 = vector.load %arg7[%c0_15, %c0_16] : memref<1x128xf32, #tpu.memory_space<vmem>>, vector<1x128xf32>
    %18 = vector.broadcast %17 : vector<1x128xf32> to vector<8x128xf32>
    %19 = arith.addf %16, %18 : vector<8x128xf32>
    %cst_17 = arith.constant 0.000000e+00 : f32
    %20 = vector.broadcast %cst_17 : f32 to vector<8x128xf32>
    %21 = arith.maximumf %19, %20 : vector<8x128xf32>
    %c0_18 = arith.constant 0 : index
    %c0_19 = arith.constant 0 : index
    %22 = vector.load %arg8[%c0_18, %c0_19] : memref<128x128xf32, #tpu.memory_space<vmem>>, vector<128x128xf32>
    %cst_20 = arith.constant dense<0.000000e+00> : vector<8x128xf32>
    %23 = tpu.matmul %21, %22, %cst_20 {dimension_numbers = #tpu.dot_dimension_numbers<[1], [0], [0], [1], [0, 0, 1, 1], [], []>, precision = #tpu.contract_precision<fp32>} : vector<8x128xf32>, vector<128x128xf32>, vector<8x128xf32> -> vector<8x128xf32>
    %c0_21 = arith.constant 0 : index
    %c0_22 = arith.constant 0 : index
    %24 = vector.load %arg9[%c0_21, %c0_22] : memref<1x128xf32, #tpu.memory_space<vmem>>, vector<1x128xf32>
    %25 = vector.broadcast %24 : vector<1x128xf32> to vector<8x128xf32>
    %26 = arith.addf %23, %25 : vector<8x128xf32>
    %c0_23 = arith.constant 0 : index
    %c0_24 = arith.constant 0 : index
    %27 = vector.load %arg10[%c0_23, %c0_24] : memref<8x128xf32, #tpu.memory_space<vmem>>, vector<8x128xf32>
    tpu.vector_store %arg10[%c0_23, %c0_24], %26 {strides = array<i32>} : memref<8x128xf32, #tpu.memory_space<vmem>>, vector<8x128xf32>,
    return
  }
  func.func @transform_0(%arg0: i32) -> (i32, i32) {
    %c0_i32 = arith.constant 0 : i32
    %c0_i32_0 = arith.constant 0 : i32
    return %arg0, %c0_i32 : i32, i32
  }
  func.func @transform_1(%arg0: i32) -> (i32, i32) {
    %c0_i32 = arith.constant 0 : i32
    %c0_i32_0 = arith.constant 0 : i32
    %c0_i32_1 = arith.constant 0 : i32
    return %c0_i32, %c0_i32_0 : i32, i32
  }
  func.func @transform_2(%arg0: i32) -> (i32, i32) {
    %c0_i32 = arith.constant 0 : i32
    %c0_i32_0 = arith.constant 0 : i32
    %c0_i32_1 = arith.constant 0 : i32
    return %c0_i32, %c0_i32_0 : i32, i32
  }
  func.func @transform_3(%arg0: i32) -> (i32, i32) {
    %c0_i32 = arith.constant 0 : i32
    %c0_i32_0 = arith.constant 0 : i32
    %c0_i32_1 = arith.constant 0 : i32
    return %c0_i32, %c0_i32_0 : i32, i32
  }
  func.func @transform_4(%arg0: i32) -> (i32, i32) {
    %c0_i32 = arith.constant 0 : i32
    %c0_i32_0 = arith.constant 0 : i32
    %c0_i32_1 = arith.constant 0 : i32
    return %c0_i32, %c0_i32_0 : i32, i32
  }
  func.func @transform_5(%arg0: i32) -> (i32, i32) {
    %c0_i32 = arith.constant 0 : i32
    %c0_i32_0 = arith.constant 0 : i32
    %c0_i32_1 = arith.constant 0 : i32
    return %c0_i32, %c0_i32_0 : i32, i32
  }
  func.func @transform_6(%arg0: i32) -> (i32, i32) {
    %c0_i32 = arith.constant 0 : i32
    %c0_i32_0 = arith.constant 0 : i32
    %c0_i32_1 = arith.constant 0 : i32
    return %c0_i32, %c0_i32_0 : i32, i32
  }
  func.func @transform_7(%arg0: i32) -> (i32, i32) {
    %c0_i32 = arith.constant 0 : i32
    %c0_i32_0 = arith.constant 0 : i32
    %c0_i32_1 = arith.constant 0 : i32
    return %c0_i32, %c0_i32_0 : i32, i32
  }
  func.func @transform_8(%arg0: i32) -> (i32, i32) {
    %c0_i32 = arith.constant 0 : i32
    %c0_i32_0 = arith.constant 0 : i32
    %c0_i32_1 = arith.constant 0 : i32
    return %c0_i32, %c0_i32_0 : i32, i32
  }
  func.func @transform_9(%arg0: i32) -> (i32, i32) {
    %c0_i32 = arith.constant 0 : i32
    %c0_i32_0 = arith.constant 0 : i32
    return %arg0, %c0_i32 : i32, i32
  }
}

</mosaic_0001>

<bundles_post_ra>
// kernel: tpu_custom_call.1
= control target key start
LH: loop header
LB: loop body
LE: loop exit
PB: predicated region body
PF: predicated region fallthrough
CT: control target
= control target key end

     0   :  { %14 = vsyncpa [#allocation3], 0  ;;  %s1710_s0 = inlined_call_operand.hbm [shape: f32[8,8], index: 0, kind: input, shape index: {}]   ;;  %s1711_s1 = inlined_call_operand.hbm [shape: f32[8,64], index: 1, kind: input, shape index: {}]   ;;  %s1712_s2 = inlined_call_operand.vmem [shape: f32[1,64], index: 2, kind: input, shape index: {}]   ;;  %s1713_s3 = inlined_call_operand.hbm [shape: f32[64,64], index: 3, kind: input, shape index: {}]   ;;  %s1714_s4 = inlined_call_operand.vmem [shape: f32[1,64], index: 4, kind: input, shape index: {}]   ;;  %s1715_s5 = inlined_call_operand.hbm [shape: f32[64,128], index: 5, kind: input, shape index: {}]   ;;  %s1716_s6 = inlined_call_operand.vmem [shape: f32[1,128], index: 6, kind: input, shape index: {}]   ;;  %s1717_s7 = inlined_call_operand.hbm [shape: f32[128,128], index: 7, kind: input, shape index: {}]   ;;  %s1718_s8 = inlined_call_operand.vmem [shape: f32[1,128], index: 8, kind: input, shape index: {}]   ;;  %s1719_s9 = inlined_call_operand.hbm [shape: f32[8,128], index: 9, kind: output, shape index: {}]  }
   0x1   :  { %15 = vsyncpa [#allocation6], 0 }
   0x2   :  { %16 = vsyncpa [#allocation9], 0  ;;  %s34_s11 = sshll.u32 %s1711_s1, 4  ;;  %s35_s11 = int_to_ptr.hbm [resolvable:$true] %s34_s11 }
   0x3   :  { %17 = vsyncpa [#allocation4], 0  ;;  %s1316_s12 = smov [#allocation5]   ;;  %s61_s16 = sshll.u32 %s1715_s5, 4  ;;  %s62_s16 = int_to_ptr.hbm [resolvable:$true] %s61_s16 }
   0x4   :  { %s36_s13 = sshll.u32 %s1316_s12, 4  ;;  %s1317_s17 = smov [#allocation8]   ;;  %s37_s13 = int_to_ptr.vmem [resolvable:$true] %s36_s13 }
   0x5   :  { %39 = dma.hbm_to_vmem [thread:$0]  %s35_s11, 128, %s37_s13, [#allocation6]  }
   0x6   :  { %s63_s18 = sshll.u32 %s1317_s17, 4  ;;  %s23_s21 = sshll.u32 %s1710_s0, 4  ;;  %s64_s18 = int_to_ptr.vmem [resolvable:$true] %s63_s18  ;;  %s24_s21 = int_to_ptr.hbm [resolvable:$true] %s23_s21 }
   0x7   :  { %s1318_s1 = smov 128   ;;  %s1319_s22 = smov 8  }
   0x8   :  { %69 = dma.hbm_to_vmem [thread:$0]  %s62_s16, 1024, %s64_s18, [#allocation9], %s1318_s1, %s1318_s1, %s1319_s22  }
   0x9   :  { %s46_s25 = sshll.u32 %s1713_s3, 4  ;;  %s1320_s26 = smov [#allocation2]   ;;  %s47_s25 = int_to_ptr.hbm [resolvable:$true] %s46_s25 }
   0xa   :  { %s25_s27 = sshll.u32 %s1320_s26, 4  ;;  %s1321_s5 = smov [#allocation7]   ;;  %s26_s27 = int_to_ptr.vmem [resolvable:$true] %s25_s27 }
   0xb   :  { %28 = dma.hbm_to_vmem [thread:$0]  %s24_s21, 128, %s26_s27, [#allocation3]  }
   0xc   :  { %s48_s28 = sshll.u32 %s1321_s5, 4  ;;  %s76_s0 = sshll.u32 %s1717_s7, 4  ;;  %s49_s28 = int_to_ptr.vmem [resolvable:$true] %s48_s28  ;;  %s77_s0 = int_to_ptr.hbm [resolvable:$true] %s76_s0 }
   0xd   :  { %54 = dma.hbm_to_vmem [thread:$0]  %s47_s25, 1024, %s49_s28, [#allocation6], %s1318_s1, %s1318_s1, %s1319_s22  }
   0xe   :  { %s1322_s10 = smov [#allocation10]  }
   0xf   :  { %s78_s11 = sshll.u32 %s1322_s10, 4  ;;  %s79_s11 = int_to_ptr.vmem [resolvable:$true] %s78_s11 }
  0x10   :  { %84 = dma.hbm_to_vmem [thread:$0]  %s77_s0, 2048, %s79_s11, [#allocation9], %s1318_s1, %s1318_s1, %s1319_s22  }
  0x11   :  { %1308 = dma.done.wait [#allocation3], 128  }
  0x12   :  { %1309 = vsyncadd [#allocation3], 4294967168 }
  0x13   :  { %1310 = dma.done.wait [#allocation6], 1152  }
  0x14   :  { %1311 = vsyncadd [#allocation6], 4294966144 }
  0x15   :  { %1312 = dma.done.wait [#allocation9], 3072  }
  0x16   :  { %1313 = vsyncadd [#allocation9], 4294964224  ;;  %vm113_vm0 = vcmask 64512   ;;  %v108_v0 = vld [vmem:[#allocation5] sm:$0xff]  ;;  %v107_v1 = vld [vmem:[#allocation2] sm:$0xff]  ;;  %vm276_vm1 = vcmask 523264  }
  0x17   :  { %v271_v2 = vld [vmem:[#allocation7 + $0x38] sm:$0xff]  ;;  %v132_v3 = vand.u32 4294901760, %v108_v0  ;;  %v115_v4 = vsel %vm113_vm0, %v107_v1, 0  ;;  %v270_v6 = vld [vmem:[#allocation7 + $0x30] sm:$0xff]  ;;  %v269_v25 = vld [vmem:[#allocation7 + $0x28] sm:$0xff]  ;;  %s1323_s15 = smov [#allocation11]  }
  0x18   :  { %v1389_v5 = vand.u32 4294901760, %v271_v2  ;;  %v134_v7 = vand.u32 4294901760, %v115_v4  ;;  %v1391_v8 = vand.u32 4294901760, %v270_v6  ;;  %v1407_v26 = vand.u32 4294901760, %v269_v25  ;;  %v268_v27 = vld [vmem:[#allocation7 + $0x20] sm:$0xff]  ;;  %v267_v30 = vld [vmem:[#allocation7 + $0x18] sm:$0xff] }
  0x19   :  { %v159_v9 = vsub.f32 %v108_v0, %v132_v3  ;;  %133 = vmatpush.msra.mxu0 %v132_v3  ;;  %209 = vmatpush.msra.mxu3 %v132_v3  ;;  %v1410_v29 = vand.u32 4294901760, %v268_v27  ;;  %v296_v33 = vand.u32 4294901760, %v267_v30  ;;  %v266_v34 = vld [vmem:[#allocation7 + $0x10] sm:$0xff]  ;;  %v265_v39 = vld [vmem:[#allocation7 + $0x8] sm:$0xff]  ;;  %v264_v45 = vld [vmem:[#allocation7] sm:$0xff]  ;;  %s1138_s16 = sshll.u32 %s1323_s15, 4  ;;  %s1139_s16 = int_to_ptr.vmem [resolvable:$true] %s1138_s16 }
  0x1a   :  { %v1394_v10 = vsub.f32 %v271_v2, %v1389_v5  ;;  %v135_v11 = vsub.f32 %v115_v4, %v134_v7  ;;  %v1397_v12 = vsub.f32 %v270_v6, %v1391_v8  ;;  %v334_v28 = vsub.f32 %v269_v25, %v1407_v26  ;;  %v1160_v61 = vld [vmem:[%s1712_s2] ss:$0 sm:$0xff]  ;;  %s1140_s19 = sshll.u32 %s1719_s9, 4  ;;  %s1141_s19 = int_to_ptr.hbm [resolvable:$true] %s1140_s19 }
  0x1b   :  { %497 = vmatpush.msrb.mxu3 %v1389_v5  ;;  %186 = vmatpush.msra.mxu2 %v159_v9  ;;  %v160_v13 = vand.u32 4294901760, %v159_v9  ;;  %v340_v32 = vsub.f32 %v268_v27, %v1410_v29  ;;  %v346_v37 = vsub.f32 %v267_v30, %v296_v33  ;;  %v298_v38 = vand.u32 4294901760, %v266_v34 }
  0x1c   :  { %v323_v14 = vand.u32 4294901760, %v1394_v10  ;;  %189 = vmatmul.f32.vlgmr.msra.gmra.mxu2 %v135_v11  ;;  %v136_v15 = vand.u32 4294901760, %v135_v11  ;;  %v329_v16 = vand.u32 4294901760, %v1397_v12  ;;  %v335_v31 = vand.u32 4294901760, %v334_v28 }
  0x1d   :  { %499 = vmatpush.msrb.mxu3 %v1391_v8  ;;  %235 = vmatpush.msrb.mxu0 %v160_v13  ;;  %v161_v17 = vsub.f32 %v159_v9, %v160_v13  ;;  %v341_v36 = vand.u32 4294901760, %v340_v32  ;;  %v347_v42 = vand.u32 4294901760, %v346_v37  ;;  %v352_v43 = vsub.f32 %v266_v34, %v298_v38 }
  0x1e   :  { %v324_v18 = vsub.f32 %v1394_v10, %v323_v14  ;;  %454 = vmatpush.msrb.mxu2 %v323_v14  ;;  %v137_v19 = vsub.f32 %v135_v11, %v136_v15  ;;  %213 = vmatmul.f32.vlgmr.msra.gmra.mxu3 %v136_v15  ;;  %v330_v20 = vsub.f32 %v1397_v12, %v329_v16  ;;  %v300_v44 = vand.u32 4294901760, %v265_v39 }
  0x1f   :  { %v162_v21 = vand.u32 4294901760, %v161_v17  ;;  %501 = vmatpush.msrb.mxu3 %v1407_v26  ;;  %v336_v35 = vsub.f32 %v334_v28, %v335_v31  ;;  %v342_v41 = vsub.f32 %v340_v32, %v341_v36  ;;  %v348_v47 = vsub.f32 %v346_v37, %v347_v42  ;;  %v525_v17 = vld [vmem:[#allocation8 + $0x38] sm:$0xff] }
  0x20   :  { %458 = vmatpush.msrb.mxu2 %v329_v16  ;;  %v138_v22 = vand.u32 4294901760, %v137_v19  ;;  %v325_v23 = vand.u32 4294901760, %v324_v18  ;;  %v331_v24 = vand.u32 4294901760, %v330_v20  ;;  %v353_v48 = vand.u32 4294901760, %v352_v43  ;;  %v524_v19 = vld [vmem:[#allocation8 + $0x30] sm:$0xff] }
  0x21   :  { %163 = vmatpush.msra.mxu1 %v162_v21  ;;  %503 = vmatpush.msrb.mxu3 %v1410_v29  ;;  %v337_v40 = vand.u32 4294901760, %v336_v35  ;;  %v343_v46 = vand.u32 4294901760, %v342_v41  ;;  %v302_v49 = vand.u32 4294901760, %v264_v45  ;;  %v358_v50 = vsub.f32 %v265_v39, %v300_v44 }
  0x22   :  { %139 = vmatmul.f32.vlgmr.msra.gmra.mxu0 %v138_v22  ;;  %165 = vmatmul.f32.vlgmr.msra.gmra.mxu1 %v134_v7  ;;  %v349_v51 = vand.u32 4294901760, %v348_v47  ;;  %v354_v52 = vsub.f32 %v352_v43, %v353_v48  ;;  %v1427_v18 = vand.u32 4294901760, %v525_v17  ;;  %v1432_v21 = vand.u32 4294901760, %v524_v19  ;;  %v523_v22 = vld [vmem:[#allocation8 + $0x28] sm:$0xff] }
  0x23   :  { %257 = vmatpush.msrb.mxu1 %v132_v3  ;;  %289 = vmatpush.msra.mxu0 %v1389_v5  ;;  %v364_v53 = vsub.f32 %v264_v45, %v302_v49  ;;  %v359_v54 = vand.u32 4294901760, %v358_v50  ;;  %v1440_v25 = vand.u32 4294901760, %v523_v22 }
  0x24   :  { %462 = vmatpush.msrb.mxu2 %v335_v31  ;;  %505 = vmatpush.msrb.mxu3 %v296_v33  ;;  %v355_v55 = vand.u32 4294901760, %v354_v52  ;;  %v1430_v20 = vsub.f32 %v525_v17, %v1427_v18  ;;  %v521_v31 = vld [vmem:[#allocation8 + $0x18] sm:$0xff] }
  0x25   :  { %326 = vmatpush.msra.mxu1 %v325_v23  ;;  %291 = vmatpush.msra.mxu0 %v1391_v8  ;;  %v365_v56 = vand.u32 4294901760, %v364_v53  ;;  %v360_v57 = vsub.f32 %v358_v50, %v359_v54 }
  0x26   :  { %466 = vmatpush.msrb.mxu2 %v341_v36  ;;  %507 = vmatpush.msrb.mxu3 %v298_v38  ;;  %v576_v23 = vand.u32 4294901760, %v1430_v20  ;;  %v549_v36 = vand.u32 4294901760, %v521_v31 }
  0x27   :  { %332 = vmatpush.msra.mxu1 %v331_v24  ;;  %293 = vmatpush.msra.mxu0 %v1407_v26  ;;  %v366_v58 = vsub.f32 %v364_v53, %v365_v56  ;;  %v361_v59 = vand.u32 4294901760, %v360_v57  ;;  %v1438_v24 = vsub.f32 %v524_v19, %v1432_v21  ;;  %v780_v19 = vld [vmem:[#allocation10 + $0x48] sm:$0xff] }
  0x28   :  { %470 = vmatpush.msrb.mxu2 %v347_v42  ;;  %509 = vmatpush.msrb.mxu3 %v300_v44  ;;  %v577_v27 = vsub.f32 %v1430_v20, %v576_v23  ;;  %v599_v42 = vsub.f32 %v521_v31, %v549_v36 }
  0x29   :  { %295 = vmatpush.msra.mxu0 %v1410_v29  ;;  %338 = vmatpush.msra.mxu1 %v337_v40  ;;  %v367_v60 = vand.u32 4294901760, %v366_v58 }
  0x2a   :  { %237 = vmatmul.f32.vlgmr.msrb.gmra.mxu0 %v134_v7  ;;  %259 = vmatmul.f32.vlgmr.msrb.gmra.mxu1 %v134_v7 }
  0x2b   :  { %297 = vmatpush.msra.mxu0 %v296_v33  ;;  %344 = vmatpush.msra.mxu1 %v343_v46 }
  0x2c   :  { %474 = vmatpush.msrb.mxu2 %v353_v48  ;;  %511 = vmatpush.msrb.mxu3 %v302_v49  ;;  %v600_v48 = vand.u32 4294901760, %v599_v42 }
  0x2d   :  { %299 = vmatpush.msra.mxu0 %v298_v38  ;;  %350 = vmatpush.msra.mxu1 %v349_v51 }
  0x2e   :  { %478 = vmatpush.msrb.mxu2 %v359_v54  ;;  %674 = vmatpush.msra.mxu3 %v1427_v18  ;;  %v601_v54 = vsub.f32 %v599_v42, %v600_v48 }
  0x2f   :  { %301 = vmatpush.msra.mxu0 %v300_v44  ;;  %356 = vmatpush.msra.mxu1 %v355_v55 }
  0x30   :  { %482 = vmatpush.msrb.mxu2 %v365_v56  ;;  %676 = vmatpush.msra.mxu3 %v1432_v21  ;;  %v602_v58 = vand.u32 4294901760, %v601_v54 }
  0x31   :  { %303 = vmatpush.msra.mxu0 %v302_v49  ;;  %362 = vmatpush.msra.mxu1 %v361_v59 }
  0x32   :  { %637 = vmatpush.msra.mxu2 %v1430_v20  ;;  %678 = vmatpush.msra.mxu3 %v1440_v25 }
  0x33   :  { %384 = vmatpush.msrb.mxu0 %v1394_v10  ;;  %368 = vmatpush.msra.mxu1 %v367_v60 }
  0x34   :  { %640 = vmatpush.msra.mxu2 %v1438_v24 }
  0x35   :  { %387 = vmatpush.msrb.mxu0 %v1397_v12  ;;  %421 = vmatpush.msrb.mxu1 %v1389_v5 }
  0x37   :  { %390 = vmatpush.msrb.mxu0 %v334_v28  ;;  %423 = vmatpush.msrb.mxu1 %v1391_v8  ;;  %v582_v28 = vand.u32 4294901760, %v1438_v24 }
  0x39   :  { %393 = vmatpush.msrb.mxu0 %v340_v32  ;;  %425 = vmatpush.msrb.mxu1 %v1407_v26  ;;  %v522_v26 = vld [vmem:[#allocation8 + $0x20] sm:$0xff]  ;;  %v578_v32 = vand.u32 4294901760, %v577_v27 }
  0x3a   :  { %v1450_v30 = vand.u32 4294901760, %v522_v26 }
  0x3b   :  { %396 = vmatpush.msrb.mxu0 %v346_v37  ;;  %427 = vmatpush.msrb.mxu1 %v1410_v29  ;;  %v1448_v29 = vsub.f32 %v523_v22, %v1440_v25  ;;  %v520_v37 = vld [vmem:[#allocation8 + $0x10] sm:$0xff] }
  0x3c   :  { %v593_v35 = vsub.f32 %v522_v26, %v1450_v30  ;;  %680 = vmatpush.msra.mxu3 %v1450_v30  ;;  %v551_v41 = vand.u32 4294901760, %v520_v37 }
  0x3d   :  { %399 = vmatpush.msrb.mxu0 %v352_v43  ;;  %429 = vmatpush.msrb.mxu1 %v296_v33  ;;  %v583_v33 = vsub.f32 %v1438_v24, %v582_v28  ;;  %v588_v34 = vand.u32 4294901760, %v1448_v29  ;;  %v519_v43 = vld [vmem:[#allocation8 + $0x8] sm:$0xff] }
  0x3e   :  { %643 = vmatpush.msra.mxu2 %v1448_v29  ;;  %v594_v40 = vand.u32 4294901760, %v593_v35  ;;  %682 = vmatpush.msra.mxu3 %v549_v36  ;;  %v605_v46 = vsub.f32 %v520_v37, %v551_v41  ;;  %v553_v47 = vand.u32 4294901760, %v519_v43 }
  0x3f   :  { %402 = vmatpush.msrb.mxu0 %v358_v50  ;;  %431 = vmatpush.msrb.mxu1 %v298_v38  ;;  %v584_v38 = vand.u32 4294901760, %v583_v33  ;;  %v589_v39 = vsub.f32 %v1448_v29, %v588_v34 }
  0x40   :  { %646 = vmatpush.msra.mxu2 %v593_v35  ;;  %v595_v45 = vsub.f32 %v593_v35, %v594_v40  ;;  %v606_v51 = vand.u32 4294901760, %v605_v46  ;;  %v611_v52 = vsub.f32 %v519_v43, %v553_v47  ;;  %684 = vmatpush.msra.mxu3 %v551_v41 }
  0x41   :  { %405 = vmatpush.msrb.mxu0 %v364_v53  ;;  %433 = vmatpush.msrb.mxu1 %v300_v44  ;;  %v590_v44 = vand.u32 4294901760, %v589_v39 }
  0x42   :  { %649 = vmatpush.msra.mxu2 %v599_v42  ;;  %v596_v50 = vand.u32 4294901760, %v595_v45  ;;  %v607_v55 = vsub.f32 %v605_v46, %v606_v51  ;;  %v612_v56 = vand.u32 4294901760, %v611_v52  ;;  %686 = vmatpush.msra.mxu3 %v553_v47  ;;  %v778_v45 = vld [vmem:[#allocation10 + $0x38] sm:$0xff] }
  0x43   :  { %435 = vmatpush.msrb.mxu1 %v302_v49  ;;  %v518_v49 = vld [vmem:[#allocation8] sm:$0xff] }
  0x44   :  { %v555_v53 = vand.u32 4294901760, %v518_v49  ;;  %652 = vmatpush.msra.mxu2 %v605_v46  ;;  %v608_v59 = vand.u32 4294901760, %v607_v55  ;;  %v613_v60 = vsub.f32 %v611_v52, %v612_v56  ;;  %v777_v46 = vld [vmem:[#allocation10 + $0x30] sm:$0xff] }
  0x46   :  { %v617_v57 = vsub.f32 %v518_v49, %v555_v53  ;;  %655 = vmatpush.msra.mxu2 %v611_v52  ;;  %688 = vmatpush.msra.mxu3 %v555_v53 }
  0x48   :  { %658 = vmatpush.msra.mxu2 %v617_v57 }
  0x9f   :  { %v140_v62 = vpop.f32.mrf.mxu0  ;;  %v166_v63 = vpop.f32.mrf.mxu1 }
  0xa0   :  { %v141_v0 = vadd.f32 %v1160_v61, %v140_v62  ;;  %v190_v1 = vpop.f32.mrf.mxu2  ;;  %v618_v61 = vand.u32 4294901760, %v617_v57  ;;  %v614_v62 = vand.u32 4294901760, %v613_v60 }
  0xa1   :  { %v214_v3 = vpop.f32.mrf.mxu3 }
  0xa2   :  { %v167_v2 = vadd.f32 %v166_v63, %v141_v0  ;;  %v619_v63 = vsub.f32 %v617_v57, %v618_v61  ;;  %v1533_v57 = vand.u32 4294901760, %v778_v45 }
  0xa4   :  { %v191_v4 = vadd.f32 %v190_v1, %v167_v2  ;;  %v620_v0 = vand.u32 4294901760, %v619_v63  ;;  %v1161_v1 = vld [vmem:[%s1714_s4] ss:$0 sm:$0xff]  ;;  %v774_v63 = vld [vmem:[#allocation10 + $0x18] sm:$0xff] }
  0xa6   :  { %v215_v5 = vadd.f32 %v214_v3, %v191_v4 }
  0xa7   :  { %v238_v6 = vpop.f32.mrf.mxu0  ;;  %v260_v7 = vpop.f32.mrf.mxu1 }
  0xa8   :  { %v239_v8 = vadd.f32 %v238_v6, %v215_v5  ;;  %v786_v5 = vld [vmem:[#allocation10 + $0x78] sm:$0xff]  ;;  %v785_v6 = vld [vmem:[#allocation10 + $0x70] sm:$0xff] }
  0xaa   :  { %v261_v9 = vadd.f32 %v260_v7, %v239_v8  ;;  %v784_v7 = vld [vmem:[#allocation10 + $0x68] sm:$0xff] }
  0xac   :  { %v263_v10 = vmax.f32 %v261_v9, 0.0  ;;  %v1469_v9 = vand.u32 4294901760, %v786_v5 }
  0xae   :  { %v278_v11 = vsel %vm276_vm1, %v263_v10, 0  ;;  %v1471_v10 = vand.u32 4294901760, %v785_v6 }
  0xaf   :  { %v304_v12 = vand.u32 4294901760, %v278_v11 }
  0xb0   :  { %v1485_v22 = vsub.f32 %v785_v6, %v1471_v10 }
  0xb1   :  { %v305_v13 = vsub.f32 %v278_v11, %v304_v12  ;;  %370 = vmatmul.f32.vlgmr.msra.gmra.mxu1 %v304_v12  ;;  %484 = vmatmul.f32.vlgmr.msrb.gmra.mxu2 %v304_v12  ;;  %v1473_v11 = vand.u32 4294901760, %v784_v7 }
  0xb2   :  { %513 = vmatmul.f32.vlgmr.msrb.gmra.mxu3 %v304_v12  ;;  %579 = vmatpush.msra.mxu1 %v578_v32  ;;  %v783_v12 = vld [vmem:[#allocation10 + $0x60] sm:$0xff]  ;;  %v840_v31 = vand.u32 4294901760, %v1485_v22 }
  0xb3   :  { %v306_v14 = vand.u32 4294901760, %v305_v13  ;;  %792 = vmatpush.msrb.mxu2 %v1469_v9 }
  0xb4   :  { %585 = vmatpush.msra.mxu1 %v584_v38  ;;  %v841_v39 = vsub.f32 %v1485_v22, %v840_v31 }
  0xb5   :  { %v307_v15 = vsub.f32 %v305_v13, %v306_v14  ;;  %794 = vmatpush.msrb.mxu2 %v1471_v10 }
  0xb6   :  { %591 = vmatpush.msra.mxu1 %v590_v44  ;;  %v779_v44 = vld [vmem:[#allocation10 + $0x40] sm:$0xff]  ;;  %v842_v49 = vand.u32 4294901760, %v841_v39 }
  0xb7   :  { %v308_v16 = vand.u32 4294901760, %v307_v15  ;;  %796 = vmatpush.msrb.mxu2 %v1473_v11 }
  0xb8   :  { %597 = vmatpush.msra.mxu1 %v596_v50  ;;  %v776_v50 = vld [vmem:[#allocation10 + $0x28] sm:$0xff] }
  0xb9   :  { %309 = vmatmul.f32.vlgmr.msra.gmra.mxu0 %v308_v16  ;;  %439 = vmatmul.f32.vlgmr.msrb.gmra.mxu1 %v306_v14  ;;  %v781_v14 = vld [vmem:[#allocation10 + $0x50] sm:$0xff]  ;;  %v1475_v16 = vand.u32 4294901760, %v783_v12 }
  0xba   :  { %542 = vmatpush.msra.mxu0 %v1427_v18  ;;  %603 = vmatpush.msra.mxu1 %v602_v58  ;;  %v1535_v58 = vand.u32 4294901760, %v777_v46 }
  0xbb   :  { %798 = vmatpush.msrb.mxu2 %v1475_v16 }
  0xbc   :  { %544 = vmatpush.msra.mxu0 %v1432_v21  ;;  %609 = vmatpush.msra.mxu1 %v608_v59 }
  0xbe   :  { %546 = vmatpush.msra.mxu0 %v1440_v25  ;;  %615 = vmatpush.msra.mxu1 %v614_v62 }
  0xc0   :  { %548 = vmatpush.msra.mxu0 %v1450_v30  ;;  %621 = vmatpush.msra.mxu1 %v620_v0 }
  0xc1   :  { %408 = vmatmul.f32.vlgmr.msrb.gmra.mxu0 %v305_v13  ;;  %v782_v13 = vld [vmem:[#allocation10 + $0x58] sm:$0xff] }
  0xc2   :  { %550 = vmatpush.msra.mxu0 %v549_v36  ;;  %750 = vmatpush.msrb.mxu1 %v1427_v18  ;;  %v1477_v17 = vand.u32 4294901760, %v782_v13  ;;  %v1479_v18 = vand.u32 4294901760, %v781_v14 }
  0xc4   :  { %552 = vmatpush.msra.mxu0 %v551_v41  ;;  %752 = vmatpush.msrb.mxu1 %v1432_v21  ;;  %v1482_v21 = vsub.f32 %v786_v5, %v1469_v9  ;;  %v1495_v26 = vsub.f32 %v782_v13, %v1477_v17  ;;  %v1498_v27 = vsub.f32 %v781_v14, %v1479_v18  ;;  %v1566_v14 = vand.u32 4294901760, %v774_v63 }
  0xc5   :  { %800 = vmatpush.msrb.mxu2 %v1477_v17 }
  0xc6   :  { %554 = vmatpush.msra.mxu0 %v553_v47  ;;  %754 = vmatpush.msrb.mxu1 %v1440_v25  ;;  %v1492_v25 = vsub.f32 %v783_v12, %v1475_v16  ;;  %v858_v35 = vand.u32 4294901760, %v1495_v26  ;;  %v864_v43 = vand.u32 4294901760, %v1498_v27 }
  0xc7   :  { %802 = vmatpush.msrb.mxu2 %v1479_v18 }
  0xc8   :  { %556 = vmatpush.msra.mxu0 %v555_v53  ;;  %756 = vmatpush.msrb.mxu1 %v1450_v30  ;;  %v834_v30 = vand.u32 4294901760, %v1482_v21  ;;  %v865_v60 = vsub.f32 %v1498_v27, %v864_v43 }
  0xca   :  { %707 = vmatpush.msrb.mxu0 %v576_v23  ;;  %758 = vmatpush.msrb.mxu1 %v549_v36  ;;  %v1488_v23 = vsub.f32 %v784_v7, %v1473_v11  ;;  %v835_v38 = vsub.f32 %v1482_v21, %v834_v30  ;;  %v773_v7 = vld [vmem:[#allocation10 + $0x10] sm:$0xff] }
  0xcc   :  { %711 = vmatpush.msrb.mxu0 %v582_v28  ;;  %760 = vmatpush.msrb.mxu1 %v551_v41  ;;  %v1500_v28 = vand.u32 4294901760, %v780_v19  ;;  %v846_v32 = vand.u32 4294901760, %v1488_v23 }
  0xce   :  { %715 = vmatpush.msrb.mxu0 %v588_v34  ;;  %762 = vmatpush.msrb.mxu1 %v553_v47  ;;  %v852_v34 = vand.u32 4294901760, %v1492_v25  ;;  %v1509_v36 = vsub.f32 %v780_v19, %v1500_v28  ;;  %v866_v19 = vand.u32 4294901760, %v865_v60 }
  0xcf   :  { %804 = vmatpush.msrb.mxu2 %v1500_v28 }
  0xd0   :  { %719 = vmatpush.msrb.mxu0 %v594_v40  ;;  %764 = vmatpush.msrb.mxu1 %v555_v53  ;;  %v847_v40 = vsub.f32 %v1488_v23, %v846_v32  ;;  %v853_v42 = vsub.f32 %v1492_v25, %v852_v34  ;;  %v859_v53 = vsub.f32 %v1495_v26, %v858_v35  ;;  %v870_v54 = vand.u32 4294901760, %v1509_v36 }
  0xd2   :  { %723 = vmatpush.msrb.mxu0 %v600_v48  ;;  %v836_v48 = vand.u32 4294901760, %v835_v38  ;;  %v848_v52 = vand.u32 4294901760, %v847_v40  ;;  %v854_v59 = vand.u32 4294901760, %v853_v42  ;;  %v860_v5 = vand.u32 4294901760, %v859_v53 }
  0xd3   :  { %v871_v6 = vsub.f32 %v1509_v36, %v870_v54  ;;  %v1587_v42 = vsub.f32 %v774_v63, %v1566_v14 }
  0xd4   :  { %727 = vmatpush.msrb.mxu0 %v606_v51  ;;  %v775_v51 = vld [vmem:[#allocation10 + $0x20] sm:$0xff]  ;;  %837 = vmatpush.msrb.mxu3 %v836_v48 }
  0xd5   :  { %v1542_v62 = vand.u32 4294901760, %v775_v51  ;;  %v872_v39 = vand.u32 4294901760, %v871_v6  ;;  %v906_v53 = vand.u32 4294901760, %v1587_v42 }
  0xd6   :  { %731 = vmatpush.msrb.mxu0 %v612_v56  ;;  %v1530_v56 = vand.u32 4294901760, %v779_v44  ;;  %843 = vmatpush.msrb.mxu3 %v842_v49 }
  0xd8   :  { %735 = vmatpush.msrb.mxu0 %v618_v61  ;;  %v1540_v61 = vand.u32 4294901760, %v776_v50  ;;  %849 = vmatpush.msrb.mxu3 %v848_v52 }
  0xd9   :  { %806 = vmatpush.msrb.mxu2 %v1530_v56 }
  0xda   :  { %v1564_v13 = vsub.f32 %v776_v50, %v1540_v61  ;;  %855 = vmatpush.msrb.mxu3 %v854_v59 }
  0xdb   :  { %808 = vmatpush.msrb.mxu2 %v1533_v57 }
  0xdc   :  { %861 = vmatpush.msrb.mxu3 %v860_v5  ;;  %v907_v5 = vsub.f32 %v1587_v42, %v906_v53 }
  0xdd   :  { %810 = vmatpush.msrb.mxu2 %v1535_v58 }
  0xde   :  { %867 = vmatpush.msrb.mxu3 %v866_v19  ;;  %v908_v19 = vand.u32 4294901760, %v907_v5 }
  0xdf   :  { %812 = vmatpush.msrb.mxu2 %v1540_v61 }
  0xe0   :  { %873 = vmatpush.msrb.mxu3 %v872_v39 }
  0xe1   :  { %814 = vmatpush.msrb.mxu2 %v1542_v62 }
  0xe3   :  { %816 = vmatpush.msrb.mxu2 %v1566_v14 }
 0x12e   :  { %v371_v2 = vpop.f32.mrf.mxu1 }
 0x134   :  { %v485_v33 = vpop.f32.mrf.mxu2 }
 0x135   :  { %v514_v41 = vpop.f32.mrf.mxu3 }
 0x136   :  { %v310_v3 = vpop.f32.mrf.mxu0  ;;  %v440_v24 = vpop.f32.mrf.mxu1 }
 0x137   :  { %v311_v4 = vadd.f32 %v1161_v1, %v310_v3  ;;  %v1546_v1 = vsub.f32 %v779_v44, %v1530_v56  ;;  %v1553_v3 = vsub.f32 %v777_v46, %v1535_v58 }
 0x139   :  { %v372_v8 = vadd.f32 %v371_v2, %v311_v4  ;;  %v1549_v2 = vsub.f32 %v778_v45, %v1533_v57 }
 0x13b   :  { %v882_v12 = vand.u32 4294901760, %v1549_v2 }
 0x13d   :  { %v883_v40 = vsub.f32 %v1549_v2, %v882_v12 }
 0x13e   :  { %v409_v15 = vpop.f32.mrf.mxu0 }
 0x13f   :  { %v410_v20 = vadd.f32 %v409_v15, %v372_v8  ;;  %v876_v8 = vand.u32 4294901760, %v1546_v1 }
 0x141   :  { %v441_v29 = vadd.f32 %v440_v24, %v410_v20  ;;  %v772_v20 = vld [vmem:[#allocation10 + $0x8] sm:$0xff]  ;;  %v877_v24 = vsub.f32 %v1546_v1, %v876_v8 }
 0x142   :  { %v1589_v44 = vand.u32 4294901760, %v772_v20 }
 0x143   :  { %v486_v37 = vadd.f32 %v485_v33, %v441_v29  ;;  %v888_v29 = vand.u32 4294901760, %v1553_v3  ;;  %v1576_v33 = vsub.f32 %v775_v51, %v1542_v62  ;;  %v878_v46 = vand.u32 4294901760, %v877_v24 }
 0x144   :  { %v884_v51 = vand.u32 4294901760, %v883_v40 }
 0x145   :  { %v515_v47 = vadd.f32 %v514_v41, %v486_v37  ;;  %v1578_v37 = vand.u32 4294901760, %v773_v7  ;;  %v894_v41 = vand.u32 4294901760, %v1564_v13  ;;  %v900_v48 = vand.u32 4294901760, %v1576_v33  ;;  %879 = vmatpush.msrb.mxu3 %v878_v46 }
 0x147   :  { %v517_v55 = vmax.f32 %v515_v47, 0.0  ;;  %v889_v47 = vsub.f32 %v1553_v3, %v888_v29  ;;  %v1598_v49 = vsub.f32 %v773_v7, %v1578_v37  ;;  %v895_v52 = vsub.f32 %v1564_v13, %v894_v41  ;;  %885 = vmatpush.msrb.mxu3 %v884_v51  ;;  %818 = vmatpush.msrb.mxu2 %v1578_v37 }
 0x148   :  { %v901_v60 = vsub.f32 %v1576_v33, %v900_v48 }
 0x149   :  { %v531_v0 = vsel %vm276_vm1, %v517_v55, 0  ;;  %v1607_v55 = vsub.f32 %v772_v20, %v1589_v44  ;;  %v890_v59 = vand.u32 4294901760, %v889_v47  ;;  %v912_v63 = vand.u32 4294901760, %v1598_v49  ;;  %820 = vmatpush.msrb.mxu2 %v1589_v44 }
 0x14a   :  { %v1555_v4 = vand.u32 4294901760, %v531_v0  ;;  %v902_v7 = vand.u32 4294901760, %v901_v60 }
 0x14b   :  { %v918_v6 = vand.u32 4294901760, %v1607_v55  ;;  %891 = vmatpush.msrb.mxu3 %v890_v59 }
 0x14c   :  { %623 = vmatmul.f32.vlgmr.msra.gmra.mxu1 %v1555_v4  ;;  %v558_v15 = vsub.f32 %v531_v0, %v1555_v4  ;;  %v896_v0 = vand.u32 4294901760, %v895_v52 }
 0x14d   :  { %988 = vmatpush.msra.mxu1 %v1469_v9  ;;  %v919_v20 = vsub.f32 %v1607_v55, %v918_v6 }
 0x14e   :  { %661 = vmatmul.f32.vlgmr.msra.gmra.mxu2 %v558_v15  ;;  %v559_v38 = vand.u32 4294901760, %v558_v15  ;;  %897 = vmatpush.msrb.mxu3 %v896_v0 }
 0x14f   :  { %990 = vmatpush.msra.mxu1 %v1471_v10 }
 0x150   :  { %692 = vmatmul.f32.vlgmr.msra.gmra.mxu3 %v559_v38  ;;  %v560_v45 = vsub.f32 %v558_v15, %v559_v38  ;;  %v913_v15 = vsub.f32 %v1598_v49, %v912_v63  ;;  %v920_v38 = vand.u32 4294901760, %v919_v20 }
 0x151   :  { %992 = vmatpush.msra.mxu1 %v1473_v11  ;;  %903 = vmatpush.msrb.mxu3 %v902_v7 }
 0x152   :  { %v561_v50 = vand.u32 4294901760, %v560_v45  ;;  %v914_v24 = vand.u32 4294901760, %v913_v15 }
 0x153   :  { %994 = vmatpush.msra.mxu1 %v1475_v16  ;;  %909 = vmatpush.msrb.mxu3 %v908_v19 }
 0x154   :  { %562 = vmatmul.f32.vlgmr.msra.gmra.mxu0 %v561_v50  ;;  %766 = vmatmul.f32.vlgmr.msrb.gmra.mxu1 %v1555_v4 }
 0x155   :  { %935 = vmatpush.msra.mxu0 %v1482_v21  ;;  %996 = vmatpush.msra.mxu1 %v1477_v17 }
 0x156   :  { %915 = vmatpush.msrb.mxu3 %v914_v24 }
 0x157   :  { %938 = vmatpush.msra.mxu0 %v1485_v22  ;;  %998 = vmatpush.msra.mxu1 %v1479_v18 }
 0x158   :  { %921 = vmatpush.msrb.mxu3 %v920_v38 }
 0x159   :  { %941 = vmatpush.msra.mxu0 %v1488_v23  ;;  %1000 = vmatpush.msra.mxu1 %v1500_v28 }
 0x15b   :  { %944 = vmatpush.msra.mxu0 %v1492_v25  ;;  %1002 = vmatpush.msra.mxu1 %v1530_v56 }
 0x15c   :  { %737 = vmatmul.f32.vlgmr.msrb.gmra.mxu0 %v1555_v4  ;;  %v771_v4 = vld [vmem:[#allocation10] sm:$0xff] }
 0x15d   :  { %947 = vmatpush.msra.mxu0 %v1495_v26  ;;  %1004 = vmatpush.msra.mxu1 %v1533_v57  ;;  %v821_v39 = vand.u32 4294901760, %v771_v4 }
 0x15f   :  { %950 = vmatpush.msra.mxu0 %v1498_v27  ;;  %1006 = vmatpush.msra.mxu1 %v1535_v58  ;;  %v923_v40 = vsub.f32 %v771_v4, %v821_v39 }
 0x160   :  { %822 = vmatpush.msrb.mxu2 %v821_v39 }
 0x161   :  { %953 = vmatpush.msra.mxu0 %v1509_v36  ;;  %1008 = vmatpush.msra.mxu1 %v1540_v61  ;;  %v924_v45 = vand.u32 4294901760, %v923_v40 }
 0x162   :  { %1029 = vmatpush.msra.mxu2 %v834_v30 }
 0x163   :  { %956 = vmatpush.msra.mxu0 %v1546_v1  ;;  %1010 = vmatpush.msra.mxu1 %v1542_v62  ;;  %v925_v46 = vsub.f32 %v923_v40, %v924_v45 }
 0x164   :  { %1033 = vmatpush.msra.mxu2 %v840_v31 }
 0x165   :  { %959 = vmatpush.msra.mxu0 %v1549_v2  ;;  %1012 = vmatpush.msra.mxu1 %v1566_v14  ;;  %v926_v47 = vand.u32 4294901760, %v925_v46 }
 0x166   :  { %1037 = vmatpush.msra.mxu2 %v846_v32 }
 0x167   :  { %962 = vmatpush.msra.mxu0 %v1553_v3  ;;  %1014 = vmatpush.msra.mxu1 %v1578_v37 }
 0x168   :  { %1041 = vmatpush.msra.mxu2 %v852_v34  ;;  %927 = vmatpush.msrb.mxu3 %v926_v47 }
 0x169   :  { %965 = vmatpush.msra.mxu0 %v1564_v13  ;;  %1016 = vmatpush.msra.mxu1 %v1589_v44 }
 0x16a   :  { %1096 = vmatpush.msra.mxu3 %v1469_v9  ;;  %1045 = vmatpush.msra.mxu2 %v858_v35  ;;  %v1162_v9 = vld [vmem:[%s1716_s6] ss:$0 sm:$0xff] }
 0x16b   :  { %968 = vmatpush.msra.mxu0 %v1576_v33  ;;  %1018 = vmatpush.msra.mxu1 %v821_v39 }
 0x16c   :  { %1098 = vmatpush.msra.mxu3 %v1471_v10  ;;  %1049 = vmatpush.msra.mxu2 %v864_v43  ;;  %v1163_v43 = vld [vmem:[%s1718_s8] ss:$0 sm:$0xff] }
 0x16d   :  { %971 = vmatpush.msra.mxu0 %v1587_v42 }
 0x16e   :  { %1100 = vmatpush.msra.mxu3 %v1473_v11  ;;  %1053 = vmatpush.msra.mxu2 %v870_v54 }
 0x16f   :  { %974 = vmatpush.msra.mxu0 %v1598_v49 }
 0x170   :  { %1102 = vmatpush.msra.mxu3 %v1475_v16  ;;  %1057 = vmatpush.msra.mxu2 %v876_v8 }
 0x171   :  { %977 = vmatpush.msra.mxu0 %v1607_v55 }
 0x172   :  { %1104 = vmatpush.msra.mxu3 %v1477_v17  ;;  %1061 = vmatpush.msra.mxu2 %v882_v12 }
 0x173   :  { %980 = vmatpush.msra.mxu0 %v923_v40 }
 0x174   :  { %1106 = vmatpush.msra.mxu3 %v1479_v18  ;;  %1065 = vmatpush.msra.mxu2 %v888_v29 }
 0x176   :  { %1108 = vmatpush.msra.mxu3 %v1500_v28  ;;  %1069 = vmatpush.msra.mxu2 %v894_v41 }
 0x178   :  { %1110 = vmatpush.msra.mxu3 %v1530_v56  ;;  %1073 = vmatpush.msra.mxu2 %v900_v48 }
 0x17a   :  { %1112 = vmatpush.msra.mxu3 %v1533_v57  ;;  %1077 = vmatpush.msra.mxu2 %v906_v53 }
 0x17c   :  { %1114 = vmatpush.msra.mxu3 %v1535_v58  ;;  %1081 = vmatpush.msra.mxu2 %v912_v63 }
 0x17e   :  { %1116 = vmatpush.msra.mxu3 %v1540_v61  ;;  %1085 = vmatpush.msra.mxu2 %v918_v6 }
 0x180   :  { %1118 = vmatpush.msra.mxu3 %v1542_v62  ;;  %1089 = vmatpush.msra.mxu2 %v924_v45 }
 0x182   :  { %1120 = vmatpush.msra.mxu3 %v1566_v14 }
 0x184   :  { %1122 = vmatpush.msra.mxu3 %v1578_v37 }
 0x186   :  { %1124 = vmatpush.msra.mxu3 %v1589_v44 }
 0x188   :  { %1126 = vmatpush.msra.mxu3 %v821_v39 }
 0x1c9   :  { %v624_v10 = vpop.f32.mrf.mxu1 }
 0x1d1   :  { %v563_v11 = vpop.f32.mrf.mxu0  ;;  %v662_v18 = vpop.f32.mrf.mxu2 }
 0x1d2   :  { %v564_v16 = vadd.f32 %v1162_v9, %v563_v11  ;;  %v767_v27 = vpop.f32.mrf.mxu1 }
 0x1d3   :  { %v693_v22 = vpop.f32.mrf.mxu3 }
 0x1d4   :  { %v625_v17 = vadd.f32 %v624_v10, %v564_v16 }
 0x1d6   :  { %v663_v21 = vadd.f32 %v662_v18, %v625_v17 }
 0x1d8   :  { %v694_v23 = vadd.f32 %v693_v22, %v663_v21 }
 0x1d9   :  { %v738_v25 = vpop.f32.mrf.mxu0 }
 0x1da   :  { %v739_v26 = vadd.f32 %v738_v25, %v694_v23 }
 0x1dc   :  { %v768_v28 = vadd.f32 %v767_v27, %v739_v26 }
 0x1de   :  { %v770_v30 = vmax.f32 %v768_v28, 0.0 }
 0x1e0   :  { %v823_v31 = vand.u32 4294901760, %v770_v30 }
 0x1e2   :  { %v824_v32 = vsub.f32 %v770_v30, %v823_v31  ;;  %929 = vmatmul.f32.vlgmr.msrb.gmra.mxu3 %v823_v31 }
 0x1e4   :  { %983 = vmatmul.f32.vlgmr.msra.gmra.mxu0 %v824_v32  ;;  %v825_v34 = vand.u32 4294901760, %v824_v32 }
 0x1e6   :  { %1022 = vmatmul.f32.vlgmr.msra.gmra.mxu1 %v825_v34  ;;  %v826_v35 = vsub.f32 %v824_v32, %v825_v34 }
 0x1e8   :  { %v827_v36 = vand.u32 4294901760, %v826_v35 }
 0x1ea   :  { %828 = vmatmul.f32.vlgmr.msrb.gmra.mxu2 %v827_v36  ;;  %1128 = vmatmul.f32.vlgmr.msra.gmra.mxu3 %v823_v31 }
 0x1f2   :  { %1091 = vmatmul.f32.vlgmr.msra.gmra.mxu2 %v823_v31 }
 0x261   :  { %v984_v61 = vpop.f32.mrf.mxu0 }
 0x263   :  { %v1023_v1 = vpop.f32.mrf.mxu1 }
 0x265   :  { %v930_v54 = vpop.f32.mrf.mxu3 }
 0x26d   :  { %v829_v56 = vpop.f32.mrf.mxu2  ;;  %v1129_v12 = vpop.f32.mrf.mxu3 }
 0x26e   :  { %v830_v57 = vadd.f32 %v1163_v43, %v829_v56 }
 0x270   :  { %v931_v58 = vadd.f32 %v930_v54, %v830_v57 }
 0x272   :  { %v985_v62 = vadd.f32 %v984_v61, %v931_v58 }
 0x274   :  { %v1024_v2 = vadd.f32 %v1023_v1, %v985_v62 }
 0x275   :  { %v1092_v3 = vpop.f32.mrf.mxu2 }
 0x276   :  { %v1093_v8 = vadd.f32 %v1092_v3, %v1024_v2 }
 0x278   :  { %v1130_v13 = vadd.f32 %v1129_v12, %v1093_v8 }
 0x27a   :  { %1132 = vst [vmem:[#allocation11] sm:$0xff] %v1130_v13 }
 0x27b   :  { %1143 = dma.vmem_to_hbm [thread:$0]  %s1139_s16, 128, %s1141_s19, [#allocation4]  }
 0x27c   :  { %1314 = dma.done.wait [#allocation4], 128  }
 0x27d   :  { %1315 = vsyncadd [#allocation4], 4294967168 }
 0x27e   :  { %1148 = vsyncpa [#allocation3], 1 }
 0x27f   :  { %1149 = vsyncpa [#allocation6], 1 }
 0x280   :  { %1150 = vsyncpa [#allocation9], 1 }
 0x281   :  { %1151 = vsyncpa [#allocation4], 1 }

</bundles_post_ra>
